<compile_context>
chip_gen: v6e
topology: v6e:2x2x1
jax: 0.10.0
libtpu: 0.0.40
codegen_flags: <defaults>
</compile_context>

<pallas_src>
import math

import jax
import jax.numpy as jnp
from jax.experimental import pallas as pl
from jax.experimental.pallas import tpu as pltpu

# --- hyperparameters from WertkaufLoss.__init__ (defaults) ---
BASE_LOSS_WEIGHT = 1.0
FP_PENALTY_WEIGHT = 2.0
THRESHOLD = 0.5
MALUS = 10.0

# sigmoid(x) > t  <=>  x > log(t / (1 - t))  -- exact for t in (0, 1).
_LOGIT_THRESHOLD = math.log(THRESHOLD / (1.0 - THRESHOLD))

# Pad value for logits: large but FINITE negative so that, with
# targets = damage = 0, padded elements contribute exactly 0 to both sums.
# (-inf would give inf*0 = NaN in the x*y BCE term.)
_LOGIT_PAD = -1.0e4

# VMEM budget for the double-buffered inputs (3 inputs x 2 buffers).  Kept
# well under the 32 MiB scoped limit so the same tiling is safe on v7x
# (64 MiB physical VMEM).
_INPUT_VMEM_BUDGET = 20 * 1024 * 1024


def _round_up(x, m):
    return ((x + m - 1) // m) * m


def _wertkauf_kernel(x_ref, y_ref, d_ref, bce_out_ref, res_out_ref):
    j = pl.program_id(1)

    @pl.when(j == 0)
    def _init():
        bce_out_ref[...] = jnp.zeros_like(bce_out_ref)
        res_out_ref[...] = jnp.zeros_like(res_out_ref)

    # Cast AFTER the load so HBM traffic stays at the narrow input width.
    x = x_ref[...].astype(jnp.float32)
    y = y_ref[...].astype(jnp.float32)
    d = d_ref[...].astype(jnp.float32)

    # Numerically stable BCE-with-logits (elementwise, pre-mean).
    bce = jnp.maximum(x, 0.0) - x * y + jnp.log(1.0 + jnp.exp(-jnp.abs(x)))

    # Penalty term folded to a single select (exact for binary {0,1} targets):
    #   tp (y=1, x>T): +5    fp (y=0, x>T): -malus    fn (y=1, x<=T): -damage
    res = jnp.where(x > _LOGIT_THRESHOLD, (5.0 + MALUS) * y - MALUS, -(y * d))

    # Fold the sublane (row) axis and accumulate into the small lane-dense
    # per-row-block partials; the cross-lane reduction is left to the wrapper.
    # TODO(synk): on VALU-bound v7x, offload this row fold to the idle MXU
    # (ones((8, tm)) @ tile) to shave the remaining add/element.
    bce_out_ref[0] += jnp.sum(bce, axis=0, keepdims=True)
    res_out_ref[0] += jnp.sum(res, axis=0, keepdims=True)


def wertkauf_loss(logits, targets, damage, *, max_rows=None, max_cols=None):
    """Scalar float32 loss matching WertkaufLoss.forward (default hparams)."""
    assert logits.shape == targets.shape == damage.shape
    assert logits.ndim == 2, "expected (batch, num_labels) inputs"
    B, F = logits.shape

    itemsizes = [jnp.dtype(a.dtype).itemsize for a in (logits, targets, damage)]
    # Sublane alignment of the row tile: 8 for 32-bit, 16 for 16-bit, 32 for 8-bit.
    sub = max(8, max(8 * (4 // s) for s in itemsizes))
    max_tile_elems = max(_INPUT_VMEM_BUDGET // (2 * sum(itemsizes)), sub * 128)

    # --- column (lane) tile: full padded feature width whenever it fits. ---
    f128 = _round_up(F, 128)
    cap_cols = f128 if max_cols is None else max(128, _round_up(min(max_cols, f128), 128))
    if cap_cols * sub <= max_tile_elems:
        tn = cap_cols
    else:  # very wide feature dim: fall back to a 2-D grid
        tn = max(128, ((max_tile_elems // sub) // 128) * 128)

    # --- row (sublane) tile: as tall as the budget / batch allows. ---
    b_aligned = _round_up(B, sub)
    tm_budget = max(sub, ((max_tile_elems // tn) // sub) * sub)
    cap_rows = b_aligned if max_rows is None else max(sub, _round_up(min(max_rows, b_aligned), sub))
    tm = min(tm_budget, cap_rows, 1024)
    if max_rows is None and tm >= b_aligned and b_aligned >= 256:
        # Keep >=2 row blocks for big batches so the "parallel" row axis can
        # be sharded across both v7x TensorCores.
        tm = max(sub, ((b_aligned // 2) // sub) * sub)

    b_pad = _round_up(B, tm)
    f_pad = _round_up(F, tn)
    grid = (b_pad // tm, f_pad // tn)

    # Zero-contribution padding (logits -> -1e4, targets/damage -> 0) removes
    # the need for any per-element validity mask inside the kernel.
    # TODO(synk): for large badly-misaligned inputs, fuse this pad into the
    # producer (or mask edge tiles only) to avoid the extra HBM pass.
    def _pad(a, value):
        if a.shape == (b_pad, f_pad):
            return a
        return jnp.pad(a, ((0, b_pad - B), (0, f_pad - F)), constant_values=value)

    logits_p = _pad(logits, _LOGIT_PAD)
    targets_p = _pad(targets, 0)
    damage_p = _pad(damage, 0)

    def in_spec():
        return pl.BlockSpec((tm, tn), lambda i, j: (i, j))

    def part_spec():
        return pl.BlockSpec((1, 1, tn), lambda i, j: (i, 0, 0))

    part_shape = jax.ShapeDtypeStruct((grid[0], 1, tn), jnp.float32)

    bce_parts, res_parts = pl.pallas_call(
        _wertkauf_kernel,
        out_shape=(part_shape, part_shape),
        grid_spec=pltpu.PrefetchScalarGridSpec(
            num_scalar_prefetch=0,
            grid=grid,
            in_specs=[in_spec(), in_spec(), in_spec()],
            out_specs=(part_spec(), part_spec()),
        ),
        compiler_params=pltpu.CompilerParams(
            dimension_semantics=("parallel", "arbitrary"),
            vmem_limit_bytes=32 * 1024 * 1024,
        ),
    )(logits_p, targets_p, damage_p)

    # Tiny epilogue on the per-row-block partials (pad region sums to 0);
    # means use the true (unpadded) sizes.
    base_loss = jnp.sum(bce_parts) / float(B * F)
    penalty = -(jnp.sum(res_parts) / float(B))
    return BASE_LOSS_WEIGHT * base_loss + FP_PENALTY_WEIGHT * penalty


def _reference(logits, targets, damage):
    """Plain-JAX reference mirroring the PyTorch module, for validation."""
    x = logits.astype(jnp.float32)
    y = targets.astype(jnp.float32)
    d = damage.astype(jnp.float32)
    bce = jnp.mean(jnp.maximum(x, 0.0) - x * y + jnp.log1p(jnp.exp(-jnp.abs(x))))
    yhat = (jax.nn.sigmoid(x) > THRESHOLD).astype(jnp.float32)
    res = ((y == 1.0) & (yhat == 1.0)).astype(jnp.float32) * 5.0
    res -= ((y == 0.0) & (yhat == 1.0)).astype(jnp.float32) * MALUS
    res -= ((y == 1.0) & (yhat == 0.0)).astype(jnp.float32) * d
    penalty = -jnp.sum(res) / x.shape[0]
    return BASE_LOSS_WEIGHT * bce + FP_PENALTY_WEIGHT * penalty


if __name__ == "__main__":
    key = jax.random.PRNGKey(0)
    k1, k2, k3 = jax.random.split(key, 3)

    # Small, deliberately tile-misaligned shapes; narrow (bf16) HBM inputs.
    B, F = 40, 300
    logits = jax.random.normal(k1, (B, F), dtype=jnp.float32).astype(jnp.bfloat16)
    targets = jax.random.bernoulli(k2, 0.3, (B, F)).astype(jnp.bfloat16)
    damage = (jax.random.uniform(k3, (B, F), dtype=jnp.float32) * 4.0).astype(jnp.bfloat16)

    ref = _reference(logits, targets, damage)

    # 1) Default path: single lane-dense block covering the padded array.
    loss = wertkauf_loss(logits, targets, damage)
    jax.block_until_ready(loss)
    assert jnp.allclose(loss, ref, rtol=2e-4, atol=1e-3), (loss, ref)

    # 2) Forced multi-tile path: grid (3, 3) with padded edge tiles and
    #    cross-column accumulation into the per-row-block partials.
    loss_tiled = wertkauf_loss(logits, targets, damage, max_rows=16, max_cols=128)
    jax.block_until_ready(loss_tiled)
    assert jnp.allclose(loss_tiled, ref, rtol=2e-4, atol=1e-3), (loss_tiled, ref)

    # 3) Aligned f32 path: no padding, grid (1, 1), 8-row sublane alignment.
    B2, F2 = 64, 256
    k4, k5, k6 = jax.random.split(jax.random.PRNGKey(1), 3)
    logits2 = jax.random.normal(k4, (B2, F2), dtype=jnp.float32)
    targets2 = jax.random.bernoulli(k5, 0.5, (B2, F2)).astype(jnp.float32)
    damage2 = jax.random.uniform(k6, (B2, F2), dtype=jnp.float32) * 3.0
    ref2 = _reference(logits2, targets2, damage2)
    loss2 = wertkauf_loss(logits2, targets2, damage2)
    jax.block_until_ready(loss2)
    assert jnp.allclose(loss2, ref2, rtol=2e-4, atol=1e-3), (loss2, ref2)

    print("KERNEL_OK")
</pallas_src>

<mosaic_0001>
module attributes {stable_mosaic.version = 11 : i64} {
  func.func @_wertkauf_kernel(%arg0: i32, %arg1: i32, %arg2: memref<48x384xbf16, #tpu.memory_space<vmem>>, %arg3: memref<48x384xbf16, #tpu.memory_space<vmem>>, %arg4: memref<48x384xbf16, #tpu.memory_space<vmem>>, %arg5: memref<1x1x384xf32, #tpu.memory_space<vmem>>, %arg6: memref<1x1x384xf32, #tpu.memory_space<vmem>>) attributes {dimension_semantics = [#tpu.dimension_semantics<parallel>, #tpu.dimension_semantics<arbitrary>], iteration_bounds = array<i64: 1, 1>, scalar_prefetch = 0 : i64, scratch_operands = 0 : i64, tpu.core_type = #tpu.core_type<tc>, window_params = [{transform_indices = @transform_0, window_bounds = array<i64: 48, 384>}, {transform_indices = @transform_1, window_bounds = array<i64: 48, 384>}, {transform_indices = @transform_2, window_bounds = array<i64: 48, 384>}, {transform_indices = @transform_3, window_bounds = array<i64: 1, 1, 384>}, {transform_indices = @transform_4, window_bounds = array<i64: 1, 1, 384>}]} {
    %c0_i32 = arith.constant 0 : i32
    %0 = arith.cmpi eq, %arg1, %c0_i32 : i32
    %1 = arith.extui %0 : i1 to i32
    %c0_i32_0 = arith.constant 0 : i32
    %2 = arith.cmpi ne, %1, %c0_i32_0 : i32
    scf.if %2 {
      %cst_26 = arith.constant 0.000000e+00 : f32
      %47 = vector.broadcast %cst_26 : f32 to vector<1x1x384xf32>
      %c0_27 = arith.constant 0 : index
      %c0_28 = arith.constant 0 : index
      %c0_29 = arith.constant 0 : index
      %48 = vector.load %arg5[%c0_27, %c0_28, %c0_29] : memref<1x1x384xf32, #tpu.memory_space<vmem>>, vector<1x1x384xf32>
      tpu.vector_store %arg5[%c0_27, %c0_28, %c0_29], %47 {strides = array<i32>} : memref<1x1x384xf32, #tpu.memory_space<vmem>>, vector<1x1x384xf32>,
      %cst_30 = arith.constant 0.000000e+00 : f32
      %49 = vector.broadcast %cst_30 : f32 to vector<1x1x384xf32>
      %c0_31 = arith.constant 0 : index
      %c0_32 = arith.constant 0 : index
      %c0_33 = arith.constant 0 : index
      %50 = vector.load %arg6[%c0_31, %c0_32, %c0_33] : memref<1x1x384xf32, #tpu.memory_space<vmem>>, vector<1x1x384xf32>
      tpu.vector_store %arg6[%c0_31, %c0_32, %c0_33], %49 {strides = array<i32>} : memref<1x1x384xf32, #tpu.memory_space<vmem>>, vector<1x1x384xf32>,
    } else {
    }
    %c0 = arith.constant 0 : index
    %c0_1 = arith.constant 0 : index
    %3 = vector.load %arg2[%c0, %c0_1] : memref<48x384xbf16, #tpu.memory_space<vmem>>, vector<48x384xbf16>
    %4 = arith.extf %3 : vector<48x384xbf16> to vector<48x384xf32>
    %c0_2 = arith.constant 0 : index
    %c0_3 = arith.constant 0 : index
    %5 = vector.load %arg3[%c0_2, %c0_3] : memref<48x384xbf16, #tpu.memory_space<vmem>>, vector<48x384xbf16>
    %6 = arith.extf %5 : vector<48x384xbf16> to vector<48x384xf32>
    %c0_4 = arith.constant 0 : index
    %c0_5 = arith.constant 0 : index
    %7 = vector.load %arg4[%c0_4, %c0_5] : memref<48x384xbf16, #tpu.memory_space<vmem>>, vector<48x384xbf16>
    %8 = arith.extf %7 : vector<48x384xbf16> to vector<48x384xf32>
    %cst = arith.constant 0.000000e+00 : f32
    %9 = vector.broadcast %cst : f32 to vector<48x384xf32>
    %10 = arith.maximumf %4, %9 : vector<48x384xf32>
    %11 = arith.mulf %4, %6 : vector<48x384xf32>
    %12 = arith.subf %10, %11 : vector<48x384xf32>
    %13 = math.absf %4 : vector<48x384xf32>
    %cst_6 = arith.constant 0.000000e+00 : f32
    %14 = vector.broadcast %cst_6 : f32 to vector<48x384xf32>
    %15 = arith.subf %14, %13 : vector<48x384xf32>
    %16 = math.exp %15 : vector<48x384xf32>
    %cst_7 = arith.constant 1.000000e+00 : f32
    %17 = vector.broadcast %cst_7 : f32 to vector<48x384xf32>
    %18 = arith.addf %17, %16 : vector<48x384xf32>
    %19 = math.log %18 : vector<48x384xf32>
    %20 = arith.addf %12, %19 : vector<48x384xf32>
    %cst_8 = arith.constant 0.000000e+00 : f32
    %21 = vector.broadcast %cst_8 : f32 to vector<48x384xf32>
    %22 = arith.cmpf ogt, %4, %21 : vector<48x384xf32>
    %cst_9 = arith.constant 1.500000e+01 : f32
    %23 = vector.broadcast %cst_9 : f32 to vector<48x384xf32>
    %24 = arith.mulf %23, %6 : vector<48x384xf32>
    %cst_10 = arith.constant 1.000000e+01 : f32
    %25 = vector.broadcast %cst_10 : f32 to vector<48x384xf32>
    %26 = arith.subf %24, %25 : vector<48x384xf32>
    %27 = arith.mulf %6, %8 : vector<48x384xf32>
    %cst_11 = arith.constant 0.000000e+00 : f32
    %28 = vector.broadcast %cst_11 : f32 to vector<48x384xf32>
    %29 = arith.subf %28, %27 : vector<48x384xf32>
    %30 = arith.select %22, %26, %29 : vector<48x384xi1>, vector<48x384xf32>
    %c0_12 = arith.constant 0 : index
    %c0_13 = arith.constant 0 : index
    %c0_14 = arith.constant 0 : index
    %31 = vector.load %arg5[%c0_12, %c0_13, %c0_14] : memref<1x1x384xf32, #tpu.memory_space<vmem>>, vector<1x1x384xf32>
    %32 = vector.shape_cast %31 : vector<1x1x384xf32> to vector<1x384xf32>
    %cst_15 = arith.constant dense<0.000000e+00> : vector<384xf32>
    %33 = vector.multi_reduction <add>, %20, %cst_15 [0] : vector<48x384xf32> to vector<384xf32>
    %34 = vector.shape_cast %33 : vector<384xf32> to vector<1x384xf32>
    %35 = arith.addf %32, %34 : vector<1x384xf32>
    %c0_16 = arith.constant 0 : index
    %c0_17 = arith.constant 0 : index
    %c0_18 = arith.constant 0 : index
    %36 = vector.load %arg5[%c0_16, %c0_17, %c0_18] : memref<1x1x384xf32, #tpu.memory_space<vmem>>, vector<1x1x384xf32>
    %37 = vector.shape_cast %36 : vector<1x1x384xf32> to vector<1x384xf32>
    %38 = vector.shape_cast %35 : vector<1x384xf32> to vector<1x1x384xf32>
    tpu.vector_store %arg5[%c0_16, %c0_17, %c0_18], %38 {strides = array<i32>} : memref<1x1x384xf32, #tpu.memory_space<vmem>>, vector<1x1x384xf32>,
    %c0_19 = arith.constant 0 : index
    %c0_20 = arith.constant 0 : index
    %c0_21 = arith.constant 0 : index
    %39 = vector.load %arg6[%c0_19, %c0_20, %c0_21] : memref<1x1x384xf32, #tpu.memory_space<vmem>>, vector<1x1x384xf32>
    %40 = vector.shape_cast %39 : vector<1x1x384xf32> to vector<1x384xf32>
    %cst_22 = arith.constant dense<0.000000e+00> : vector<384xf32>
    %41 = vector.multi_reduction <add>, %30, %cst_22 [0] : vector<48x384xf32> to vector<384xf32>
    %42 = vector.shape_cast %41 : vector<384xf32> to vector<1x384xf32>
    %43 = arith.addf %40, %42 : vector<1x384xf32>
    %c0_23 = arith.constant 0 : index
    %c0_24 = arith.constant 0 : index
    %c0_25 = arith.constant 0 : index
    %44 = vector.load %arg6[%c0_23, %c0_24, %c0_25] : memref<1x1x384xf32, #tpu.memory_space<vmem>>, vector<1x1x384xf32>
    %45 = vector.shape_cast %44 : vector<1x1x384xf32> to vector<1x384xf32>
    %46 = vector.shape_cast %43 : vector<1x384xf32> to vector<1x1x384xf32>
    tpu.vector_store %arg6[%c0_23, %c0_24, %c0_25], %46 {strides = array<i32>} : memref<1x1x384xf32, #tpu.memory_space<vmem>>, vector<1x1x384xf32>,
    return
  }
  func.func @transform_0(%arg0: i32, %arg1: i32) -> (i32, i32) {
    %c0_i32 = arith.constant 0 : i32
    return %arg0, %arg1 : i32, i32
  }
  func.func @transform_1(%arg0: i32, %arg1: i32) -> (i32, i32) {
    %c0_i32 = arith.constant 0 : i32
    return %arg0, %arg1 : i32, i32
  }
  func.func @transform_2(%arg0: i32, %arg1: i32) -> (i32, i32) {
    %c0_i32 = arith.constant 0 : i32
    return %arg0, %arg1 : i32, i32
  }
  func.func @transform_3(%arg0: i32, %arg1: i32) -> (i32, i32, i32) {
    %c0_i32 = arith.constant 0 : i32
    %c0_i32_0 = arith.constant 0 : i32
    %c0_i32_1 = arith.constant 0 : i32
    return %arg0, %c0_i32, %c0_i32_0 : i32, i32, i32
  }
  func.func @transform_4(%arg0: i32, %arg1: i32) -> (i32, i32, i32) {
    %c0_i32 = arith.constant 0 : i32
    %c0_i32_0 = arith.constant 0 : i32
    %c0_i32_1 = arith.constant 0 : i32
    return %arg0, %c0_i32, %c0_i32_0 : i32, i32, i32
  }
}

</mosaic_0001>

<bundles_post_ra>
// kernel: tpu_custom_call.1
= control target key start
LH: loop header
LB: loop body
LE: loop exit
PB: predicated region body
PF: predicated region fallthrough
CT: control target
= control target key end

     0   :  { %10 = vsyncpa [#allocation3], 0  ;;  %s1377_s0 = inlined_call_operand.hbm [shape: bf16[48,384], index: 0, kind: input, shape index: {}]   ;;  %s1378_s1 = inlined_call_operand.hbm [shape: bf16[48,384], index: 1, kind: input, shape index: {}]   ;;  %s1379_s2 = inlined_call_operand.hbm [shape: bf16[48,384], index: 2, kind: input, shape index: {}]   ;;  %s1380_s3 = inlined_call_operand.hbm [shape: f32[1,1,384], index: 3, kind: output, shape index: {0}]   ;;  %s1381_s4 = inlined_call_operand.hbm [shape: f32[1,1,384], index: 4, kind: output, shape index: {1}]  }
   0x1   :  { %11 = vsyncpa [#allocation6], 0 }
   0x2   :  { %12 = vsyncpa [#allocation4], 0 }
   0x3   :  { %13 = vsyncpa [#allocation10], 0  ;;  %s832_s15 = smov [#allocation5]   ;;  %s833_s17 = smov [#allocation2]  }
   0x4   :  { %s31_s16 = sshll.u32 %s832_s15, 4  ;;  %s19_s18 = sshll.u32 %s833_s17, 4  ;;  %s32_s16 = int_to_ptr.vmem [resolvable:$true] %s31_s16  ;;  %s20_s18 = int_to_ptr.vmem [resolvable:$true] %s19_s18 }
   0x5   :  { %s732_s19 = scalar_lea.vmem %s32_s16, 1152  ;;  %p737_p1 = scmp.lt.s32.totalorder %s32_s16, %s32_s16 }
   0x6   :  { %p733_p0 = scmp.ne.s32.totalorder %s32_s16, %s732_s19  ;;  %p738_p2 = scmp.lt.s32.totalorder %s732_s19, %s732_s19 }
   0x8   :  { %p739_p3 = por %p738_p2, %p737_p1 }
   0xa   :  { %p740_p4 = pnand %p739_p3, %p733_p0 }
   0xc   :  { %743 = shalt.err (!%p740_p4)
}
   0xd   :  { %s834_s20 = smov 192   ;;  %s835_s21 = smov 12  }
   0xe   :  { %37 = dma.hbm_to_vmem [thread:$0]  %s1378_s1, 1152, %s32_s16, [#allocation6], %s834_s20, %s834_s20, %s835_s21  }
   0xf   :  { %s752_s24 = scalar_lea.vmem %s20_s18, 1152  ;;  %p757_p6 = scmp.lt.s32.totalorder %s20_s18, %s20_s18 }
  0x10   :  { %p753_p5 = scmp.ne.s32.totalorder %s20_s18, %s752_s24  ;;  %p758_p7 = scmp.lt.s32.totalorder %s752_s24, %s752_s24 }
  0x12   :  { %p759_p8 = por %p758_p7, %p757_p6 }
  0x14   :  { %p760_p9 = pnand %p759_p8, %p753_p5 }
  0x16   :  { %763 = shalt.err (!%p760_p9)
}
  0x17   :  { %25 = dma.hbm_to_vmem [thread:$0]  %s1377_s0, 1152, %s20_s18, [#allocation3], %s834_s20, %s834_s20, %s835_s21  }
  0x18   :  { %s836_s27 = smov [#allocation7]  }
  0x19   :  { %s43_s28 = sshll.u32 %s836_s27, 4  ;;  %s44_s28 = int_to_ptr.vmem [resolvable:$true] %s43_s28 }
  0x1a   :  { %s772_s29 = scalar_lea.vmem %s44_s28, 1152  ;;  %p777_p11 = scmp.lt.s32.totalorder %s44_s28, %s44_s28 }
  0x1b   :  { %p773_p10 = scmp.ne.s32.totalorder %s44_s28, %s772_s29  ;;  %p778_p12 = scmp.lt.s32.totalorder %s772_s29, %s772_s29 }
  0x1d   :  { %p779_p13 = por %p778_p12, %p777_p11 }
  0x1f   :  { %p780_p0 = pnand %p779_p13, %p773_p10 }
  0x21   :  { %783 = shalt.err (!%p780_p0)
}
  0x22   :  { %49 = dma.hbm_to_vmem [thread:$0]  %s1379_s2, 1152, %s44_s28, [#allocation6], %s834_s20, %s834_s20, %s835_s21  }
  0x23   :  { %824 = dma.done.wait [#allocation3], 1152  }
  0x24   :  { %825 = vsyncadd [#allocation3], 4294966144 }
  0x25   :  { %826 = dma.done.wait [#allocation6], 2304  }
  0x26   :  { %827 = vsyncadd [#allocation6], 4294964992  ;;  %v1382_v0 = vlaneseq  ;;  %v1453_v1 = vmov 0  ;;  %v837_v2 = vmov 0.0   ;;  %v69_v3 = vld [vmem:[#allocation2] sm:$0xff]  ;;  %v71_v5 = vld [vmem:[#allocation2 + $0xc] sm:$0xff] }
  0x27   :  { %v70_v4 = vld [vmem:[#allocation2 + $0x8] ss:$12 sps:$4 sm:$0xff]   ;;  %v73_v6 = vld [vmem:[#allocation2 + $0x18] sm:$0xff]  ;;  %v74_v7 = vld [vmem:[#allocation2 + $0x20] ss:$12 sps:$4 sm:$0xff]   ;;  %v884_v12 = vunpack.c.l.bf16 %v69_v3  ;;  %v886_v13 = vunpack.c.h.bf16 %v69_v3  ;;  %v890_v15 = vunpack.c.l.bf16 %v71_v5  ;;  %v892_v16 = vunpack.c.h.bf16 %v71_v5  ;;  %s839_s0 = smov [#allocation8]  }
  0x28   :  { %vm876_vm0 = vcmp.lt.s32.totalorder %v1382_v0, 384  ;;  %v75_v8 = vld [vmem:[#allocation2 + $0x24] sm:$0xff]  ;;  %v77_v9 = vld [vmem:[#allocation2 + $0x30] sm:$0xff]  ;;  %v79_v11 = vld [vmem:[#allocation2 + $0x3c] sm:$0xff]  ;;  %v888_v14 = vunpack.c.l.bf16 %v70_v4  ;;  %v894_v17 = vunpack.c.h.bf16 %v70_v4  ;;  %v896_v18 = vunpack.c.l.bf16 %v73_v6  ;;  %s601_s2 = sshll.u32 %s839_s0, 4  ;;  %s840_s5 = smov [#allocation9]   ;;  %s602_s2 = int_to_ptr.vmem [resolvable:$true] %s601_s2 }
  0x29   :  { %v1454_v1 = vsel %vm876_vm0, 4294967295, %v1453_v1  ;;  %67 = vst.msk [vmem:[#allocation8] sm:$0x7] %vm876_vm0, %v837_v2  ;;  %68 = vst.msk [vmem:[#allocation9] sm:$0x7] %vm876_vm0, %v837_v2  ;;  %v898_v19 = vunpack.c.h.bf16 %v73_v6  ;;  %v99_v20 = vld [vmem:[#allocation5] sm:$0xff]  ;;  %v900_v21 = vunpack.c.l.bf16 %v74_v7  ;;  %v902_v22 = vunpack.c.l.bf16 %v75_v8  ;;  %p789_p2 = scmp.lt.s32.totalorder %s602_s2, %s602_s2 }
  0x2a   :  { %1455 = vst [vmem:[#allocation15_spill] sm:$0xff] %v1454_v1  ;;  %v78_v10 = vld [vmem:[#allocation2 + $0x38] ss:$12 sps:$4 sm:$0xff]   ;;  %v904_v23 = vunpack.c.h.bf16 %v75_v8  ;;  %v906_v24 = vunpack.c.h.bf16 %v74_v7  ;;  %v100_v25 = vld [vmem:[#allocation5 + $0x8] ss:$12 sps:$4 sm:$0xff]   ;;  %v908_v27 = vunpack.c.l.bf16 %v77_v9  ;;  %v910_v28 = vunpack.c.h.bf16 %v77_v9  ;;  %v954_v56 = vld [vmem:[#allocation7 + $0x18] sm:$0xff] }
  0x2b   :  { %v101_v26 = vld [vmem:[#allocation5 + $0xc] sm:$0xff]  ;;  %v912_v29 = vunpack.c.l.bf16 %v78_v10  ;;  %v914_v30 = vunpack.c.l.bf16 %v79_v11  ;;  %v103_v31 = vld [vmem:[#allocation5 + $0x18] sm:$0xff]  ;;  %v105_v33 = vld [vmem:[#allocation5 + $0x24] sm:$0xff]  ;;  %v916_v34 = vunpack.c.h.bf16 %v79_v11  ;;  %v918_v35 = vunpack.c.h.bf16 %v78_v10  ;;  %1480 = vst [vmem:[#allocation40_spill] sm:$0xff] %v954_v56  ;;  %s611_s6 = sshll.u32 %s840_s5, 4  ;;  %s784_s7 = scalar_lea.vmem %s602_s2, 48  ;;  %s612_s6 = int_to_ptr.vmem [resolvable:$true] %s611_s6 }
  0x2c   :  { %1456 = vst [vmem:[#allocation16_spill] sm:$0xff] %v904_v23  ;;  %1457 = vst [vmem:[#allocation17_spill] sm:$0xff] %v906_v24  ;;  %v104_v32 = vld [vmem:[#allocation5 + $0x20] ss:$12 sps:$4 sm:$0xff]   ;;  %v107_v36 = vld [vmem:[#allocation5 + $0x30] sm:$0xff]  ;;  %v920_v37 = vunpack.c.l.bf16 %v99_v20  ;;  %v922_v38 = vunpack.c.h.bf16 %v99_v20  ;;  %v924_v41 = vunpack.c.l.bf16 %v100_v25  ;;  %v926_v42 = vunpack.c.l.bf16 %v101_v26  ;;  %p785_p1 = scmp.ne.s32.totalorder %s602_s2, %s784_s7  ;;  %s788_s8 = scalar_lea.vmem %s602_s2, 64 }
  0x2d   :  { %1458 = vst [vmem:[#allocation18_spill] sm:$0xff] %v908_v27  ;;  %1459 = vst [vmem:[#allocation19_spill] sm:$0xff] %v910_v28  ;;  %v108_v39 = vld [vmem:[#allocation5 + $0x38] ss:$12 sps:$4 sm:$0xff]   ;;  %v109_v40 = vld [vmem:[#allocation5 + $0x3c] sm:$0xff]  ;;  %v928_v43 = vunpack.c.h.bf16 %v101_v26  ;;  %v930_v44 = vunpack.c.h.bf16 %v100_v25  ;;  %v932_v45 = vunpack.c.l.bf16 %v103_v31  ;;  %v934_v46 = vunpack.c.h.bf16 %v103_v31  ;;  %p790_p3 = scmp.lt.s32.totalorder %s788_s8, %s784_s7 }
  0x2e   :  { %1460 = vst [vmem:[#allocation20_spill] sm:$0xff] %v912_v29  ;;  %1461 = vst [vmem:[#allocation21_spill] sm:$0xff] %v914_v30  ;;  %v936_v47 = vunpack.c.l.bf16 %v104_v32  ;;  %v938_v48 = vunpack.c.l.bf16 %v105_v33  ;;  %v940_v49 = vld [vmem:[#allocation7] sm:$0xff]  ;;  %v942_v50 = vld [vmem:[#allocation7 + $0x8] ss:$12 sps:$4 sm:$0xff]   ;;  %v946_v52 = vunpack.c.h.bf16 %v105_v33  ;;  %v948_v53 = vunpack.c.h.bf16 %v104_v32 }
  0x2f   :  { %1462 = vst [vmem:[#allocation22_spill] sm:$0xff] %v916_v34  ;;  %1463 = vst [vmem:[#allocation23_spill] sm:$0xff] %v918_v35  ;;  %v944_v51 = vld [vmem:[#allocation7 + $0xc] sm:$0xff]  ;;  %v950_v54 = vunpack.c.l.bf16 %v107_v36  ;;  %v952_v55 = vunpack.c.h.bf16 %v107_v36  ;;  %v956_v57 = vunpack.c.l.bf16 %v108_v39  ;;  %v958_v58 = vunpack.c.l.bf16 %v109_v40  ;;  %v966_v62 = vld [vmem:[#allocation7 + $0x24] sm:$0xff]  ;;  %p791_p4 = por %p790_p3, %p789_p2 }
  0x30   :  { %1464 = vst [vmem:[#allocation24_spill] sm:$0xff] %v922_v38  ;;  %1465 = vst [vmem:[#allocation25_spill] sm:$0xff] %v924_v41  ;;  %v960_v59 = vunpack.c.h.bf16 %v109_v40  ;;  %v962_v60 = vunpack.c.h.bf16 %v108_v39  ;;  %v964_v61 = vld [vmem:[#allocation7 + $0x20] ss:$12 sps:$4 sm:$0xff]   ;;  %v968_v63 = vld [vmem:[#allocation7 + $0x30] sm:$0xff]  ;;  %v159_v20 = vmax.f32 %v884_v12, 0.0  ;;  %v177_v1 = vmul.f32 %v920_v37, %v884_v12 }
  0x31   :  { %1466 = vst [vmem:[#allocation26_spill] sm:$0xff] %v926_v42  ;;  %1467 = vst [vmem:[#allocation27_spill] sm:$0xff] %v928_v43  ;;  %v970_v2 = vld [vmem:[#allocation7 + $0x38] ss:$12 sps:$4 sm:$0xff]   ;;  %v972_v3 = vld [vmem:[#allocation7 + $0x3c] sm:$0xff]  ;;  %v160_v25 = vmax.f32 %v886_v13, 0.0  ;;  %v183_v4 = vmul.f32 %v932_v45, %v896_v18  ;;  %v184_v56 = vmul.f32 %v934_v46, %v898_v19  ;;  %p792_p5 = pnand %p791_p4, %p785_p1 }
  0x32   :  { %1468 = vst [vmem:[#allocation28_spill] sm:$0xff] %v930_v44  ;;  %1469 = vst [vmem:[#allocation29_spill] sm:$0xff] %v932_v45  ;;  %v161_v26 = vmax.f32 %v888_v14, 0.0  ;;  %v162_v31 = vmax.f32 %v890_v15, 0.0  ;;  %v163_v32 = vmax.f32 %v892_v16, 0.0  ;;  %v164_v33 = vmax.f32 %v894_v17, 0.0 }
  0x33   :  { %1470 = vst [vmem:[#allocation30_spill] sm:$0xff] %v934_v46  ;;  %1471 = vst [vmem:[#allocation31_spill] sm:$0xff] %v936_v47  ;;  %v165_v36 = vmax.f32 %v896_v18, 0.0  ;;  %v166_v39 = vmax.f32 %v898_v19, 0.0  ;;  %v167_v40 = vmax.f32 %v900_v21, 0.0  ;;  %v168_v0 = vmax.f32 %v902_v22, 0.0 }
  0x34   :  { %1472 = vst [vmem:[#allocation32_spill] sm:$0xff] %v938_v48  ;;  %1473 = vst [vmem:[#allocation33_spill] sm:$0xff] %v940_v49  ;;  %v169_v11 = vmax.f32 %v904_v23, 0.0  ;;  %v170_v10 = vmax.f32 %v906_v24, 0.0  ;;  %v171_v9 = vmax.f32 %v908_v27, 0.0  ;;  %v172_v8 = vmax.f32 %v910_v28, 0.0 }
  0x35   :  { %1474 = vst [vmem:[#allocation34_spill] sm:$0xff] %v942_v50  ;;  %1475 = vst [vmem:[#allocation35_spill] sm:$0xff] %v944_v51  ;;  %v173_v7 = vmax.f32 %v912_v29, 0.0  ;;  %v174_v6 = vmax.f32 %v914_v30, 0.0  ;;  %v175_v5 = vmax.f32 %v916_v34, 0.0  ;;  %v185_v51 = vmul.f32 %v936_v47, %v900_v21 }
  0x36   :  { %1476 = vst [vmem:[#allocation36_spill] sm:$0xff] %v946_v52  ;;  %1477 = vst [vmem:[#allocation37_spill] sm:$0xff] %v948_v53  ;;  %v186_v50 = vmul.f32 %v938_v48, %v902_v22  ;;  %v190_v45 = vmul.f32 %v952_v55, %v910_v28  ;;  %v191_v46 = vmul.f32 %v956_v57, %v912_v29  ;;  %vm357_vm1 = vcmp.gt.f32.partialorder %v884_v12, 0.0 }
  0x37   :  { %1478 = vst [vmem:[#allocation38_spill] sm:$0xff] %v950_v54  ;;  %1479 = vst [vmem:[#allocation39_spill] sm:$0xff] %v952_v55  ;;  %v192_v47 = vmul.f32 %v958_v58, %v914_v30  ;;  %v193_v48 = vmul.f32 %v960_v59, %v916_v34  ;;  %vm358_vm2 = vcmp.gt.f32.partialorder %v886_v13, 0.0  ;;  %vm359_vm3 = vcmp.gt.f32.partialorder %v888_v14, 0.0 }
  0x38   :  { %1481 = vst [vmem:[#allocation41_spill] sm:$0xff] %v956_v57  ;;  %1482 = vst [vmem:[#allocation42_spill] sm:$0xff] %v958_v58  ;;  %v213_v57 = vand.u32 2147483647, %v884_v12  ;;  %vm360_vm4 = vcmp.gt.f32.partialorder %v890_v15, 0.0  ;;  %vm361_vm5 = vcmp.gt.f32.partialorder %v892_v16, 0.0 }
  0x39   :  { %1483 = vst [vmem:[#allocation43_spill] sm:$0xff] %v960_v59  ;;  %1484 = vst [vmem:[#allocation44_spill] sm:$0xff] %v962_v60  ;;  %v215_v59 = vand.u32 2147483647, %v888_v14  ;;  %vm362_vm6 = vcmp.gt.f32.partialorder %v894_v17, 0.0  ;;  %vm363_vm7 = vcmp.gt.f32.partialorder %v896_v18, 0.0 }
  0x3a   :  { %1485 = vst [vmem:[#allocation45_spill] sm:$0xff] %v964_v61  ;;  %1486 = vst [vmem:[#allocation46_spill] sm:$0xff] %v966_v62  ;;  %v181_v62 = vmul.f32 %v928_v43, %v892_v16  ;;  %v182_v61 = vmul.f32 %v930_v44, %v894_v17  ;;  %v188_v43 = vmul.f32 %v948_v53, %v906_v24  ;;  %vm364_vm8 = vcmp.gt.f32.partialorder %v898_v19, 0.0 }
  0x3b   :  { %1487 = vst [vmem:[#allocation47_spill] sm:$0xff] %v968_v63  ;;  %1488 = vst [vmem:[#allocation48_spill] sm:$0xff] %v970_v2  ;;  %v179_v2 = vmul.f32 %v924_v41, %v888_v14  ;;  %v180_v63 = vmul.f32 %v926_v42, %v890_v15  ;;  %v187_v42 = vmul.f32 %v946_v52, %v904_v23  ;;  %vm365_vm9 = vcmp.gt.f32.partialorder %v900_v21, 0.0 }
  0x3c   :  { %1489 = vst [vmem:[#allocation49_spill] sm:$0xff] %v972_v3  ;;  %v178_v3 = vmul.f32 %v922_v38, %v886_v13  ;;  %v189_v44 = vmul.f32 %v950_v54, %v908_v27  ;;  %v1046_v52 = vmul.f32 %v962_v60, %v918_v35  ;;  %v1048_v53 = vsub.f32 %v159_v20, %v177_v1 }
  0x3d   :  { %v1052_v54 = vsub.f32 %v161_v26, %v179_v2  ;;  %v1054_v55 = vsub.f32 %v162_v31, %v180_v63  ;;  %v214_v38 = vand.u32 2147483647, %v886_v13  ;;  %v1058_v58 = vsub.f32 %v163_v32, %v181_v62  ;;  %v1581_v13 = vld [vmem:[#allocation23_spill] sm:$0xff] }
  0x3e   :  { %v1050_v41 = vsub.f32 %v160_v25, %v178_v3  ;;  %v1060_v49 = vsub.f32 %v164_v33, %v182_v61  ;;  %v216_v60 = vand.u32 2147483647, %v890_v15  ;;  %v1064_v1 = vsub.f32 %v165_v36, %v183_v4 }
  0x3f   :  { %1490 = vst [vmem:[#allocation50_spill] sm:$0xff] %v1052_v54  ;;  %1491 = vst [vmem:[#allocation51_spill] sm:$0xff] %v1054_v55  ;;  %v1066_v3 = vsub.f32 %v166_v39, %v184_v56  ;;  %v1068_v2 = vsub.f32 %v167_v40, %v185_v51  ;;  %v217_v63 = vand.u32 2147483647, %v892_v16  ;;  %v1071_v20 = vsub.f32 %v168_v0, %v186_v50 }
  0x40   :  { %1492 = vst [vmem:[#allocation52_spill] sm:$0xff] %v1058_v58  ;;  %1493 = vst [vmem:[#allocation53_spill] sm:$0xff] %v1060_v49  ;;  %v1073_v25 = vsub.f32 %v169_v11, %v187_v42  ;;  %v1075_v62 = vsub.f32 %v170_v10, %v188_v43  ;;  %v218_v61 = vand.u32 2147483647, %v894_v17  ;;  %v1078_v26 = vsub.f32 %v171_v9, %v189_v44  ;;  %v1535_v49 = vld [vmem:[#allocation43_spill] sm:$0xff] }
  0x41   :  { %1494 = vst [vmem:[#allocation54_spill] sm:$0xff] %v1064_v1  ;;  %1495 = vst [vmem:[#allocation55_spill] sm:$0xff] %v1066_v3  ;;  %v219_v31 = vand.u32 2147483647, %v896_v18  ;;  %v231_v4 = vsub.f32 0.0, %v213_v57  ;;  %v232_v32 = vsub.f32 0.0, %v214_v38  ;;  %v1083_v0 = vsub.f32 %v172_v8, %v190_v45 }
  0x42   :  { %1496 = vst [vmem:[#allocation56_spill] sm:$0xff] %v1068_v2  ;;  %1497 = vst [vmem:[#allocation57_spill] sm:$0xff] %v1071_v20  ;;  %v220_v56 = vand.u32 2147483647, %v898_v19  ;;  %v221_v51 = vand.u32 2147483647, %v900_v21  ;;  %v1087_v10 = vsub.f32 %v173_v7, %v191_v46  ;;  %v1091_v9 = vsub.f32 %v174_v6, %v192_v47 }
  0x43   :  { %1498 = vst [vmem:[#allocation58_spill] sm:$0xff] %v1073_v25  ;;  %1499 = vst [vmem:[#allocation59_spill] sm:$0xff] %v1075_v62  ;;  %v233_v33 = vsub.f32 0.0, %v215_v59  ;;  %v234_v36 = vsub.f32 0.0, %v216_v60  ;;  %v222_v42 = vand.u32 2147483647, %v902_v22  ;;  %v1093_v60 = vsub.f32 %v175_v5, %v193_v48 }
  0x44   :  { %1500 = vst [vmem:[#allocation60_spill] sm:$0xff] %v1078_v26  ;;  %1501 = vst [vmem:[#allocation61_spill] sm:$0xff] %v1083_v0  ;;  %v223_v43 = vand.u32 2147483647, %v904_v23  ;;  %v235_v50 = vsub.f32 0.0, %v217_v63  ;;  %v236_v38 = vsub.f32 0.0, %v218_v61 }
  0x45   :  { %1502 = vst [vmem:[#allocation62_spill] sm:$0xff] %v1087_v10  ;;  %v224_v44 = vand.u32 2147483647, %v906_v24  ;;  %v225_v57 = vand.u32 2147483647, %v908_v27  ;;  %1503 = vst [vmem:[#allocation63_spill] sm:$0xff] %v1091_v9 }
  0x46   :  { %v237_v11 = vsub.f32 0.0, %v219_v31  ;;  %v249_v39 = vmul.f32 1.442695, %v231_v4  ;;  %v251_v59 = vmul.f32 1.442695, %v232_v32  ;;  %1504 = vst [vmem:[#allocation64_spill] sm:$0xff] %v1093_v60 }
  0x47   :  { %v238_v45 = vsub.f32 0.0, %v220_v56  ;;  %v253_v8 = vmul.f32 1.442695, %v233_v33  ;;  %v255_v40 = vmul.f32 1.442695, %v234_v36  ;;  %v239_v63 = vsub.f32 0.0, %v221_v51 }
  0x48   :  { %v226_v0 = vand.u32 2147483647, %v910_v28  ;;  %652 = vpow2.f32 %v249_v39  ;;  %v257_v46 = vmul.f32 1.442695, %v235_v50  ;;  %v227_v7 = vand.u32 2147483647, %v912_v29 }
  0x49   :  { %v240_v10 = vsub.f32 0.0, %v222_v42  ;;  %654 = vpow2.f32 %v251_v59  ;;  %v259_v61 = vmul.f32 1.442695, %v236_v38  ;;  %v228_v47 = vand.u32 2147483647, %v914_v30  ;;  %v1526_v60 = vld [vmem:[#allocation30_spill] sm:$0xff] }
  0x4a   :  { %v241_v6 = vsub.f32 0.0, %v223_v43  ;;  %656 = vpow2.f32 %v253_v8  ;;  %v261_v31 = vmul.f32 1.442695, %v237_v11  ;;  %v229_v48 = vand.u32 2147483647, %v916_v34  ;;  %v1527_v9 = vld [vmem:[#allocation31_spill] sm:$0xff] }
  0x4b   :  { %v242_v5 = vsub.f32 0.0, %v224_v44  ;;  %658 = vpow2.f32 %v255_v40  ;;  %v263_v4 = vmul.f32 1.442695, %v238_v45  ;;  %v230_v32 = vand.u32 2147483647, %v918_v35  ;;  %v1507_v44 = vld [vmem:[#allocation33_spill] sm:$0xff] }
  0x4c   :  { %v243_v56 = vsub.f32 0.0, %v225_v57  ;;  %660 = vpow2.f32 %v257_v46  ;;  %v265_v51 = vmul.f32 1.442695, %v239_v63  ;;  %v1505_v33 = vmax.f32 %v918_v35, 0.0  ;;  %v1511_v46 = vld [vmem:[#allocation25_spill] sm:$0xff]  ;;  %v1532_v20 = vld [vmem:[#allocation39_spill] sm:$0xff] }
  0x4d   :  { %v244_v42 = vsub.f32 0.0, %v226_v0  ;;  %662 = vpow2.f32 %v259_v61  ;;  %v267_v43 = vmul.f32 1.442695, %v240_v10  ;;  %v245_v50 = vsub.f32 0.0, %v227_v7  ;;  %v1512_v7 = vld [vmem:[#allocation34_spill] sm:$0xff]  ;;  %v1533_v3 = vld [vmem:[#allocation41_spill] sm:$0xff] }
  0x4e   :  { %v1103_v36 = vsub.f32 %v1505_v33, %v1046_v52  ;;  %664 = vpow2.f32 %v261_v31  ;;  %v269_v38 = vmul.f32 1.442695, %v241_v6  ;;  %v1508_v11 = vunpack.c.l.bf16 %v1507_v44  ;;  %v1509_v52 = vld [vmem:[#allocation24_spill] sm:$0xff]  ;;  %v1514_v31 = vld [vmem:[#allocation26_spill] sm:$0xff] }
  0x4f   :  { %v246_v59 = vsub.f32 0.0, %v228_v47  ;;  %v247_v57 = vsub.f32 0.0, %v229_v48  ;;  %666 = vpow2.f32 %v263_v4  ;;  %v271_v45 = vmul.f32 1.442695, %v242_v5  ;;  %v1515_v47 = vld [vmem:[#allocation35_spill] sm:$0xff]  ;;  %v1519_v33 = vld [vmem:[#allocation28_spill] sm:$0xff] }
  0x50   :  { %1506 = vst [vmem:[#allocation65_spill] sm:$0xff] %v1103_v36  ;;  %v1108_v39 = vmul.f32 %v1508_v11, %v920_v37  ;;  %v248_v8 = vsub.f32 0.0, %v230_v32  ;;  %668 = vpow2.f32 %v265_v51  ;;  %v273_v40 = vmul.f32 1.442695, %v243_v56  ;;  %v1517_v32 = vld [vmem:[#allocation27_spill] sm:$0xff]  ;;  %v1534_v1 = vld [vmem:[#allocation42_spill] sm:$0xff] }
  0x51   :  { %v1510_v0 = vunpack.c.h.bf16 %v1507_v44  ;;  %670 = vpow2.f32 %v267_v43  ;;  %v275_v10 = vmul.f32 1.442695, %v244_v42  ;;  %v1513_v61 = vunpack.c.l.bf16 %v1512_v7  ;;  %v1536_v28 = vld [vmem:[#allocation44_spill] sm:$0xff]  ;;  %v1585_v18 = vld [vmem:[#allocation62_spill] sm:$0xff] }
  0x52   :  { %v1516_v48 = vunpack.c.l.bf16 %v1515_v47  ;;  %672 = vpow2.f32 %v269_v38  ;;  %v277_v5 = vmul.f32 1.442695, %v245_v50  ;;  %v1518_v56 = vunpack.c.h.bf16 %v1515_v47 }
  0x53   :  { %v1113_v63 = vmul.f32 %v1510_v0, %v1509_v52  ;;  %v1118_v6 = vmul.f32 %v1513_v61, %v1511_v46  ;;  %v1520_v42 = vunpack.c.h.bf16 %v1512_v7  ;;  %674 = vpow2.f32 %v271_v45  ;;  %v1522_v0 = vld [vmem:[#allocation29_spill] sm:$0xff]  ;;  %v1523_v61 = vld [vmem:[#allocation40_spill] sm:$0xff] }
  0x54   :  { %v1123_v4 = vmul.f32 %v1516_v48, %v1514_v31  ;;  %v1128_v51 = vmul.f32 %v1518_v56, %v1517_v32  ;;  %v279_v44 = vmul.f32 1.442695, %v246_v59  ;;  %v281_v11 = vmul.f32 1.442695, %v247_v57 }
  0x55   :  { %v1133_v43 = vmul.f32 %v1520_v42, %v1519_v33  ;;  %v1524_v36 = vunpack.c.l.bf16 %v1523_v61  ;;  %676 = vpow2.f32 %v273_v40  ;;  %v283_v50 = vmul.f32 1.442695, %v248_v8  ;;  %v653_v56 = vpop.eup %652 }
  0x56   :  { %v375_v38 = vmul.f32 15.0, %v920_v37  ;;  %v376_v47 = vmul.f32 15.0, %v1509_v52  ;;  %678 = vpow2.f32 %v275_v10  ;;  %v377_v7 = vmul.f32 15.0, %v1511_v46  ;;  %v655_v57 = vpop.eup %654 }
  0x57   :  { %1521 = vst [vmem:[#allocation33_spill] sm:$0xff] %v1133_v43  ;;  %v1138_v48 = vmul.f32 %v1524_v36, %v1522_v0  ;;  %v378_v42 = vmul.f32 15.0, %v1514_v31  ;;  %v379_v59 = vmul.f32 15.0, %v1517_v32  ;;  %680 = vpow2.f32 %v277_v5  ;;  %v657_v8 = vpop.eup %656  ;;  %v1528_v31 = vld [vmem:[#allocation32_spill] sm:$0xff] }
  0x58   :  { %v285_v45 = vadd.f32 1.0, %v653_v56  ;;  %v380_v36 = vmul.f32 15.0, %v1519_v33  ;;  %v381_v40 = vmul.f32 15.0, %v1522_v0  ;;  %682 = vpow2.f32 %v279_v44  ;;  %v659_v26 = vpop.eup %658  ;;  %v1529_v32 = vld [vmem:[#allocation36_spill] sm:$0xff]  ;;  %v1530_v33 = vld [vmem:[#allocation37_spill] sm:$0xff]  ;;  %v1531_v0 = vld [vmem:[#allocation38_spill] sm:$0xff] }
  0x59   :  { %1525 = vst [vmem:[#allocation24_spill] sm:$0xff] %v1138_v48  ;;  %v286_v37 = vadd.f32 1.0, %v655_v57  ;;  %v382_v52 = vmul.f32 15.0, %v1526_v60  ;;  %v383_v10 = vmul.f32 15.0, %v1527_v9  ;;  %684 = vpow2.f32 %v281_v11  ;;  %v661_v5 = vpop.eup %660 }
  0x5a   :  { %v287_v46 = vadd.f32 1.0, %v657_v8  ;;  %v384_v62 = vmul.f32 15.0, %v1528_v31  ;;  %v385_v35 = vmul.f32 15.0, %v1529_v32  ;;  %686 = vpow2.f32 %v283_v50  ;;  %v663_v44 = vpop.eup %662 }
  0x5b   :  { %v288_v56 = vadd.f32 1.0, %v659_v26  ;;  %v386_v25 = vmul.f32 15.0, %v1530_v33  ;;  %v387_v34 = vmul.f32 15.0, %v1531_v0  ;;  %v289_v57 = vadd.f32 1.0, %v661_v5  ;;  %v665_v11 = vpop.eup %664 }
  0x5c   :  { %688 = vlog2.f32 %v285_v45  ;;  %v388_v2 = vmul.f32 15.0, %v1532_v20  ;;  %v389_v30 = vmul.f32 15.0, %v1533_v3  ;;  %v290_v8 = vadd.f32 1.0, %v663_v44  ;;  %v667_v50 = vpop.eup %666 }
  0x5d   :  { %690 = vlog2.f32 %v286_v37  ;;  %v390_v29 = vmul.f32 15.0, %v1534_v1  ;;  %v391_v58 = vmul.f32 15.0, %v1535_v49  ;;  %v291_v26 = vadd.f32 1.0, %v665_v11  ;;  %v669_v5 = vpop.eup %668 }
  0x5e   :  { %692 = vlog2.f32 %v287_v46  ;;  %v392_v27 = vmul.f32 15.0, %v1536_v28  ;;  %v1158_v55 = vadd.f32 -10.0, %v375_v38  ;;  %v292_v45 = vadd.f32 1.0, %v667_v50  ;;  %v671_v44 = vpop.eup %670 }
  0x5f   :  { %694 = vlog2.f32 %v288_v56  ;;  %v1160_v48 = vadd.f32 -10.0, %v376_v47  ;;  %v1162_v24 = vadd.f32 -10.0, %v377_v7  ;;  %v293_v37 = vadd.f32 1.0, %v669_v5  ;;  %v673_v11 = vpop.eup %672 }
  0x60   :  { %696 = vlog2.f32 %v289_v57  ;;  %v1164_v23 = vadd.f32 -10.0, %v378_v42  ;;  %v1166_v54 = vadd.f32 -10.0, %v379_v59  ;;  %v294_v46 = vadd.f32 1.0, %v671_v44  ;;  %v675_v50 = vpop.eup %674 }
  0x61   :  { %698 = vlog2.f32 %v290_v8  ;;  %v1168_v43 = vadd.f32 -10.0, %v380_v36  ;;  %v1170_v38 = vadd.f32 -10.0, %v381_v40  ;;  %v295_v56 = vadd.f32 1.0, %v673_v11 }
  0x62   :  { %700 = vlog2.f32 %v291_v26  ;;  %v1172_v47 = vadd.f32 -10.0, %v382_v52  ;;  %v1174_v7 = vadd.f32 -10.0, %v383_v10  ;;  %v677_v5 = vpop.eup %676  ;;  %v296_v57 = vadd.f32 1.0, %v675_v50 }
  0x63   :  { %702 = vlog2.f32 %v292_v45  ;;  %v1176_v42 = vadd.f32 -10.0, %v384_v62  ;;  %v1178_v59 = vadd.f32 -10.0, %v385_v35  ;;  %v679_v44 = vpop.eup %678  ;;  %v297_v8 = vadd.f32 1.0, %v677_v5 }
  0x64   :  { %704 = vlog2.f32 %v293_v37  ;;  %v1180_v36 = vadd.f32 -10.0, %v386_v25  ;;  %v1182_v40 = vadd.f32 -10.0, %v387_v34  ;;  %v681_v11 = vpop.eup %680  ;;  %v298_v26 = vadd.f32 1.0, %v679_v44  ;;  %v1545_v44 = vld [vmem:[#allocation45_spill] sm:$0xff] }
  0x65   :  { %706 = vlog2.f32 %v294_v46  ;;  %v1184_v52 = vadd.f32 -10.0, %v388_v2  ;;  %v1186_v10 = vadd.f32 -10.0, %v389_v30  ;;  %v683_v50 = vpop.eup %682  ;;  %v299_v45 = vadd.f32 1.0, %v681_v11 }
  0x66   :  { %1537 = vst [vmem:[#allocation25_spill] sm:$0xff] %v1180_v36  ;;  %1538 = vst [vmem:[#allocation34_spill] sm:$0xff] %v1182_v40  ;;  %708 = vlog2.f32 %v295_v56  ;;  %v1188_v62 = vadd.f32 -10.0, %v390_v29  ;;  %v1190_v35 = vadd.f32 -10.0, %v391_v58  ;;  %v685_v5 = vpop.eup %684  ;;  %v300_v37 = vadd.f32 1.0, %v683_v50  ;;  %v1547_v58 = vld [vmem:[#allocation46_spill] sm:$0xff] }
  0x67   :  { %1539 = vst [vmem:[#allocation26_spill] sm:$0xff] %v1184_v52  ;;  %1540 = vst [vmem:[#allocation35_spill] sm:$0xff] %v1186_v10  ;;  %710 = vlog2.f32 %v296_v57  ;;  %v1192_v25 = vadd.f32 -10.0, %v392_v27  ;;  %v1544_v34 = vunpack.c.h.bf16 %v1523_v61  ;;  %v687_v2 = vpop.eup %686  ;;  %v301_v30 = vadd.f32 1.0, %v685_v5  ;;  %v1572_v52 = vld [vmem:[#allocation53_spill] sm:$0xff]  ;;  %v1574_v40 = vld [vmem:[#allocation54_spill] sm:$0xff] }
  0x68   :  { %1541 = vst [vmem:[#allocation27_spill] sm:$0xff] %v1188_v62  ;;  %1542 = vst [vmem:[#allocation28_spill] sm:$0xff] %v1190_v35  ;;  %712 = vlog2.f32 %v297_v8  ;;  %v1546_v56 = vunpack.c.l.bf16 %v1545_v44  ;;  %v1548_v11 = vunpack.c.l.bf16 %v1547_v58  ;;  %v302_v57 = vadd.f32 1.0, %v687_v2  ;;  %v1568_v35 = vld [vmem:[#allocation51_spill] sm:$0xff]  ;;  %v1577_v36 = vld [vmem:[#allocation56_spill] sm:$0xff] }
  0x69   :  { %1543 = vst [vmem:[#allocation29_spill] sm:$0xff] %v1192_v25  ;;  %v1197_v46 = vmul.f32 %v1544_v34, %v1526_v60  ;;  %v689_v27 = vpop.eup %688  ;;  %714 = vlog2.f32 %v298_v26  ;;  %v1549_v60 = vunpack.c.h.bf16 %v1547_v58  ;;  %v1550_v8 = vunpack.c.h.bf16 %v1545_v44 }
  0x6a   :  { %v1202_v29 = vmul.f32 %v1546_v56, %v1527_v9  ;;  %v1207_v50 = vmul.f32 %v1548_v11, %v1528_v31  ;;  %v691_v9 = vpop.eup %690  ;;  %v304_v34 = vmul.f32 0.6931472, %v689_v27  ;;  %716 = vlog2.f32 %v299_v45  ;;  %v1551_v56 = vld [vmem:[#allocation47_spill] sm:$0xff] }
  0x6b   :  { %v1212_v61 = vmul.f32 %v1549_v60, %v1529_v32  ;;  %v1217_v5 = vmul.f32 %v1550_v8, %v1530_v33  ;;  %v1552_v31 = vunpack.c.l.bf16 %v1551_v56  ;;  %v1553_v26 = vunpack.c.h.bf16 %v1551_v56  ;;  %v693_v32 = vpop.eup %692  ;;  %v1554_v33 = vld [vmem:[#allocation48_spill] sm:$0xff] }
  0x6c   :  { %v306_v58 = vmul.f32 0.6931472, %v691_v9  ;;  %718 = vlog2.f32 %v300_v37  ;;  %v1555_v45 = vunpack.c.l.bf16 %v1554_v33  ;;  %v695_v8 = vpop.eup %694  ;;  %vm366_vm10 = vcmp.gt.f32.partialorder %v902_v22, 0.0 }
  0x6d   :  { %v1222_v11 = vmul.f32 %v1552_v31, %v1531_v0  ;;  %v1227_v2 = vmul.f32 %v1553_v26, %v1532_v20  ;;  %v1556_v0 = vld [vmem:[#allocation49_spill] sm:$0xff]  ;;  %v308_v20 = vmul.f32 0.6931472, %v693_v32  ;;  %720 = vlog2.f32 %v301_v30  ;;  %v697_v31 = vpop.eup %696 }
  0x6e   :  { %v1234_v44 = vmul.f32 %v1555_v45, %v1533_v3  ;;  %v1557_v27 = vunpack.c.l.bf16 %v1556_v0  ;;  %v1558_v37 = vunpack.c.h.bf16 %v1556_v0  ;;  %v1559_v3 = vunpack.c.h.bf16 %v1554_v33  ;;  %v699_v32 = vpop.eup %698 }
  0x6f   :  { %722 = vlog2.f32 %v302_v57  ;;  %v429_v30 = vsub.f32 0.0, %v1108_v39  ;;  %v430_v26 = vsub.f32 0.0, %v1113_v63  ;;  %v312_v45 = vmul.f32 0.6931472, %v697_v31  ;;  %v701_v33 = vpop.eup %700  ;;  %v1562_v39 = vld [vmem:[#allocation33_spill] sm:$0xff]  ;;  %v1567_v31 = vld [vmem:[#allocation24_spill] sm:$0xff] }
  0x70   :  { %v1239_v60 = vmul.f32 %v1557_v27, %v1534_v1  ;;  %v1246_v9 = vmul.f32 %v1558_v37, %v1535_v49  ;;  %v1251_v56 = vmul.f32 %v1559_v3, %v1536_v28  ;;  %v310_v1 = vmul.f32 0.6931472, %v695_v8  ;;  %v1563_v37 = vld [vmem:[#allocation50_spill] sm:$0xff] }
  0x71   :  { %v1258_v49 = vadd.f32 %v304_v34, %v1048_v53  ;;  %v431_v28 = vsub.f32 0.0, %v1118_v6  ;;  %v432_v57 = vsub.f32 0.0, %v1123_v4  ;;  %v314_v0 = vmul.f32 0.6931472, %v699_v32  ;;  %v703_v34 = vpop.eup %702  ;;  %v1565_v6 = vld [vmem:[#allocation16_spill] sm:$0xff]  ;;  %v1566_v4 = vld [vmem:[#allocation17_spill] sm:$0xff] }
  0x72   :  { %v1265_v27 = vadd.f32 %v306_v58, %v1050_v41  ;;  %v433_v53 = vsub.f32 0.0, %v1128_v51  ;;  %v434_v63 = vsub.f32 0.0, %v1562_v39  ;;  %v316_v8 = vmul.f32 0.6931472, %v701_v33  ;;  %v705_v32 = vpop.eup %704  ;;  %v1569_v51 = vld [vmem:[#allocation18_spill] sm:$0xff] }
  0x73   :  { %1560 = vst [vmem:[#allocation40_spill] sm:$0xff] %v1258_v49  ;;  %v1272_v3 = vadd.f32 %v308_v20, %v1563_v37  ;;  %vm367_vm11 = vcmp.gt.f32.partialorder %v1565_v6, 0.0  ;;  %vm368_vm12 = vcmp.gt.f32.partialorder %v1566_v4, 0.0  ;;  %v435_v41 = vsub.f32 0.0, %v1567_v31  ;;  %v707_v37 = vpop.eup %706  ;;  %v1575_v4 = vld [vmem:[#allocation21_spill] sm:$0xff] }
  0x74   :  { %1561 = vst [vmem:[#allocation30_spill] sm:$0xff] %v1265_v27  ;;  %v436_v58 = vsub.f32 0.0, %v1197_v46  ;;  %v318_v25 = vmul.f32 0.6931472, %v703_v34  ;;  %v342_v62 = vadd.f32 %v310_v1, %v1568_v35  ;;  %vm369_vm13 = vcmp.gt.f32.partialorder %v1569_v51, 0.0  ;;  %v709_v49 = vpop.eup %708  ;;  %v1573_v1 = vld [vmem:[#allocation20_spill] sm:$0xff] }
  0x75   :  { %1564 = vst [vmem:[#allocation31_spill] sm:$0xff] %v1272_v3  ;;  %v437_v33 = vsub.f32 0.0, %v1202_v29  ;;  %v438_v20 = vsub.f32 0.0, %v1207_v50  ;;  %v320_v10 = vmul.f32 0.6931472, %v705_v32  ;;  %v1571_v3 = vld [vmem:[#allocation52_spill] sm:$0xff]  ;;  %v344_v35 = vadd.f32 %v314_v0, %v1572_v52  ;;  %v711_v51 = vpop.eup %710 }
  0x76   :  { %v343_v27 = vadd.f32 %v312_v45, %v1571_v3  ;;  %v439_v31 = vsub.f32 0.0, %v1212_v61  ;;  %v440_v46 = vsub.f32 0.0, %v1217_v5  ;;  %v322_v34 = vmul.f32 0.6931472, %v707_v37  ;;  %v713_v45 = vpop.eup %712  ;;  %v1576_v37 = vld [vmem:[#allocation55_spill] sm:$0xff] }
  0x77   :  { %vm371_vm15 = vcmp.gt.f32.partialorder %v1573_v1, 0.0  ;;  %v441_v39 = vsub.f32 0.0, %v1222_v11  ;;  %v442_v29 = vsub.f32 0.0, %v1227_v2  ;;  %v324_v50 = vmul.f32 0.6931472, %v709_v49  ;;  %v715_v1 = vpop.eup %714 }
  0x78   :  { %v345_v32 = vadd.f32 %v316_v8, %v1574_v40  ;;  %v443_v61 = vsub.f32 0.0, %v1234_v44  ;;  %v444_v5 = vsub.f32 0.0, %v1239_v60  ;;  %v326_v3 = vmul.f32 0.6931472, %v711_v51  ;;  %v717_v60 = vpop.eup %716  ;;  %v1578_v51 = vld [vmem:[#allocation57_spill] sm:$0xff] }
  0x79   :  { %v346_v52 = vadd.f32 %v318_v25, %v1576_v37  ;;  %v445_v0 = vsub.f32 0.0, %v1246_v9  ;;  %v446_v11 = vsub.f32 0.0, %v1251_v56  ;;  %v328_v2 = vmul.f32 0.6931472, %v713_v45  ;;  %v1579_v37 = vld [vmem:[#allocation22_spill] sm:$0xff]  ;;  %v719_v12 = vpop.eup %718 }
  0x7a   :  { %v347_v49 = vadd.f32 %v320_v10, %v1577_v36  ;;  %v447_v40 = vsel %vm357_vm1, %v1158_v55, %v429_v30  ;;  %v448_v44 = vsel %vm358_vm2, %v1160_v48, %v430_v26  ;;  %v330_v8 = vmul.f32 0.6931472, %v715_v1  ;;  %v1580_v10 = vld [vmem:[#allocation58_spill] sm:$0xff]  ;;  %v721_v14 = vpop.eup %720  ;;  %v1582_v26 = vld [vmem:[#allocation59_spill] sm:$0xff] }
  0x7b   :  { %v348_v25 = vadd.f32 %v322_v34, %v1578_v51  ;;  %vm373_vm14 = vcmp.gt.f32.partialorder %v1579_v37, 0.0  ;;  %v449_v9 = vsel %vm359_vm3, %v1162_v24, %v431_v28  ;;  %v450_v36 = vsel %vm360_vm4, %v1164_v23, %v432_v57  ;;  %v1583_v34 = vld [vmem:[#allocation60_spill] sm:$0xff]  ;;  %v1597_v51 = vld [vmem:[#allocation35_spill] sm:$0xff] }
  0x7c   :  { %v332_v55 = vmul.f32 0.6931472, %v717_v60  ;;  %v349_v56 = vadd.f32 %v324_v50, %v1580_v10  ;;  %vm374_vm1 = vcmp.gt.f32.partialorder %v1581_v13, 0.0  ;;  %v451_v48 = vsel %vm361_vm5, %v1166_v54, %v433_v53  ;;  %v723_v57 = vpop.eup %722  ;;  %v1584_v54 = vld [vmem:[#allocation61_spill] sm:$0xff]  ;;  %v1588_v50 = vld [vmem:[#allocation34_spill] sm:$0xff] }
  0x7d   :  { %v452_v30 = vsel %vm362_vm6, %v1168_v43, %v434_v63  ;;  %v334_v24 = vmul.f32 0.6931472, %v719_v12  ;;  %v350_v28 = vadd.f32 %v326_v3, %v1582_v26  ;;  %v453_v15 = vsel %vm363_vm7, %v1170_v38, %v435_v41  ;;  %v1594_v3 = vld [vmem:[#allocation63_spill] sm:$0xff]  ;;  %v1595_v60 = vld [vmem:[#allocation30_spill] sm:$0xff] }
  0x7e   :  { %v454_v23 = vsel %vm364_vm8, %v1172_v47, %v436_v58  ;;  %v351_v16 = vadd.f32 %v328_v2, %v1583_v34  ;;  %v352_v53 = vadd.f32 %v330_v8, %v1584_v54  ;;  %v455_v17 = vsel %vm365_vm9, %v1174_v7, %v437_v33  ;;  %v1586_v47 = vld [vmem:[#allocation25_spill] sm:$0xff]  ;;  %v1590_v7 = vld [vmem:[#allocation26_spill] sm:$0xff]  ;;  %v1591_v33 = vld [vmem:[#allocation19_spill] sm:$0xff] }
  0x7f   :  { %v456_v43 = vsel %vm366_vm10, %v1176_v42, %v438_v20  ;;  %v336_v63 = vmul.f32 0.6931472, %v721_v14  ;;  %v353_v38 = vadd.f32 %v332_v55, %v1585_v18  ;;  %v457_v19 = vsel %vm367_vm11, %v1178_v59, %v439_v31  ;;  %v1593_v42 = vld [vmem:[#allocation40_spill] sm:$0xff]  ;;  %v1596_v59 = vld [vmem:[#allocation31_spill] sm:$0xff] }
  0x80   :  { %v458_v58 = vsel %vm368_vm12, %v1586_v47, %v440_v46  ;;  %v338_v1 = vmul.f32 0.6931472, %v723_v57  ;;  %v459_v21 = vsel %vm369_vm13, %v1588_v50, %v441_v39  ;;  %vm1592_vm2 = vcmp.gt.f32.partialorder %v1591_v33, 0.0  ;;  %v1599_v14 = vld [vmem:[#allocation27_spill] sm:$0xff] }
  0x81   :  { %v460_v22 = vsel %vm1592_vm2, %v1590_v7, %v442_v29  ;;  %v466_v20 = vadd.f32 %v342_v62, %v1593_v42  ;;  %v354_v2 = vadd.f32 %v334_v24, %v1594_v3  ;;  %v477_v6 = vadd.f32 %v343_v27, %v1595_v60  ;;  %v1601_v24 = vld [vmem:[#allocation64_spill] sm:$0xff] }
  0x82   :  { %v488_v31 = vadd.f32 %v344_v35, %v1596_v59  ;;  %v533_v8 = vadd.f32 %v450_v36, %v447_v40  ;;  %v461_v12 = vsel %vm371_vm15, %v1597_v51, %v443_v61  ;;  %v544_v10 = vadd.f32 %v451_v48, %v448_v44  ;;  %v1602_v40 = vld [vmem:[#allocation65_spill] sm:$0xff] }
  0x83   :  { %v467_v55 = vadd.f32 %v466_v20, %v345_v32  ;;  %v555_v39 = vadd.f32 %v452_v30, %v449_v9  ;;  %vm1600_vm3 = vcmp.gt.f32.partialorder %v1575_v4, 0.0  ;;  %v478_v26 = vadd.f32 %v477_v6, %v346_v52  ;;  %v1603_v32 = vld [vmem:[#allocation28_spill] sm:$0xff]  ;;  %v1604_v52 = vld [vmem:[#allocation29_spill] sm:$0xff] }
  0x84   :  { %v462_v29 = vsel %vm1600_vm3, %v1599_v14, %v444_v5  ;;  %v489_v62 = vadd.f32 %v488_v31, %v347_v49  ;;  %v534_v57 = vadd.f32 %v533_v8, %v453_v15  ;;  %v355_v34 = vadd.f32 %v336_v63, %v1601_v24 }
  0x85   :  { %v468_v27 = vadd.f32 %v467_v55, %v348_v25  ;;  %v545_v54 = vadd.f32 %v544_v10, %v454_v23  ;;  %v556_v35 = vadd.f32 %v555_v39, %v455_v17  ;;  %v356_v36 = vadd.f32 %v338_v1, %v1602_v40 }
  0x86   :  { %v479_v18 = vadd.f32 %v478_v26, %v349_v56  ;;  %v490_v47 = vadd.f32 %v489_v62, %v350_v28  ;;  %v535_v61 = vadd.f32 %v534_v57, %v456_v43  ;;  %v463_v44 = vsel %vm373_vm14, %v1603_v32, %v445_v0 }
  0x87   :  { %v469_v9 = vadd.f32 %v468_v27, %v351_v16  ;;  %v546_v4 = vadd.f32 %v545_v54, %v457_v19  ;;  %v557_v5 = vadd.f32 %v556_v35, %v458_v58  ;;  %v464_v49 = vsel %vm374_vm1, %v1604_v52, %v446_v11 }
  0x88   :  { %v480_v48 = vadd.f32 %v479_v18, %v352_v53  ;;  %v491_v25 = vadd.f32 %v490_v47, %v353_v38  ;;  %v536_v30 = vadd.f32 %v535_v61, %v459_v21  ;;  %v838_v19 = vmov 1966171168  }
  0x89   :  { %v470_v15 = vadd.f32 %v469_v9, %v354_v2  ;;  %v547_v23 = vadd.f32 %v546_v4, %v460_v22  ;;  %v558_v17 = vadd.f32 %v557_v5, %v461_v12  ;;  %v504_v58 = vunpack.c.l.s4 %v838_v19  ;;  %v465_v4 = vld [vmem:[#allocation8] sm:$0x7] }
  0x8a   :  { %v481_v56 = vadd.f32 %v480_v48, %v355_v34  ;;  %v492_v28 = vadd.f32 %v491_v25, %v356_v36  ;;  %v537_v43 = vadd.f32 %v536_v30, %v462_v29  ;;  %v1605_v7 = vlaneseq }
  0x8b   :  { %v471_v63 = vrot.slane %v470_v15, 4  ;;  %v548_v41 = vadd.f32 %v547_v23, %v463_v44  ;;  %v559_v37 = vadd.f32 %v558_v17, %v464_v49  ;;  %v505_v2 = vunpack.c.0.s8 %v504_v58  ;;  %v532_v49 = vld [vmem:[#allocation9] sm:$0x7] }
  0x8c   :  { %v482_v0 = vrot.slane %v481_v56, 4  ;;  %v493_v16 = vrot.slane %v492_v28, 4  ;;  %v538_v1 = vrot.slane %v537_v43, 4  ;;  %v507_v33 = vshrl.u32 %v1605_v7, 7 }
  0x8d   :  { %v472_v50 = vadd.f32 %v471_v63, %v470_v15  ;;  %v549_v13 = vrot.slane %v548_v41, 4  ;;  %v560_v11 = vrot.slane %v559_v37, 4 }
  0x8e   :  { %v483_v53 = vadd.f32 %v482_v0, %v481_v56  ;;  %v494_v38 = vadd.f32 %v493_v16, %v492_v28  ;;  %v539_v45 = vadd.f32 %v538_v1, %v537_v43  ;;  %v508_v29 = vsub.s32 %v505_v2, %v507_v33 }
  0x8f   :  { %v473_v21 = vrot.slane %v472_v50, 2  ;;  %v550_v22 = vadd.f32 %v549_v13, %v548_v41  ;;  %v561_v42 = vadd.f32 %v560_v11, %v559_v37 }
  0x90   :  { %v484_v20 = vrot.slane %v483_v53, 2  ;;  %v495_v3 = vrot.slane %v494_v38, 2  ;;  %v540_v60 = vrot.slane %v539_v45, 2 }
  0x91   :  { %v474_v6 = vadd.f32 %v473_v21, %v472_v50  ;;  %v551_v59 = vrot.slane %v550_v22, 2  ;;  %v562_v31 = vrot.slane %v561_v42, 2 }
  0x92   :  { %v485_v8 = vadd.f32 %v484_v20, %v483_v53  ;;  %v496_v51 = vadd.f32 %v495_v3, %v494_v38  ;;  %v541_v46 = vadd.f32 %v540_v60, %v539_v45 }
  0x93   :  { %v475_v12 = vrot.slane %v474_v6, 1  ;;  %v552_v55 = vadd.f32 %v551_v59, %v550_v22  ;;  %v563_v10 = vadd.f32 %v562_v31, %v561_v42 }
  0x94   :  { %v486_v39 = vrot.slane %v485_v8, 1  ;;  %v497_v14 = vrot.slane %v496_v51, 1  ;;  %v542_v26 = vrot.slane %v541_v46, 1 }
  0x95   :  { %v476_v62 = vadd.f32 %v475_v12, %v474_v6  ;;  %v553_v57 = vrot.slane %v552_v55, 1  ;;  %v564_v24 = vrot.slane %v563_v10, 1 }
  0x96   :  { %v487_v34 = vadd.f32 %v486_v39, %v485_v8  ;;  %v498_v27 = vadd.f32 %v497_v14, %v496_v51  ;;  %v543_v54 = vadd.f32 %v542_v26, %v541_v46 }
  0x97   :  { %v554_v35 = vadd.f32 %v553_v57, %v552_v55  ;;  %v565_v40 = vadd.f32 %v564_v24, %v563_v10 }
  0x98   :  { %v502_v36 = vcombine.low %v476_v62, %v487_v34  ;;  %v516_v18 = vrot.slane %v498_v27, %v508_v29 }
  0x99   :  { %v569_v47 = vcombine.low %v543_v54, %v554_v35  ;;  %v583_v61 = vrot.slane %v565_v40, %v508_v29 }
  0x9a   :  { %v509_v32 = vrot.slane %v502_v36, %v508_v29 }
  0x9b   :  { %v576_v44 = vrot.slane %v569_v47, %v508_v29 }
  0x9c   :  { %v517_v9 = vcombine.low %v509_v32, %v516_v18 }
  0x9d   :  { %v584_v5 = vcombine.low %v576_v44, %v583_v61 }
  0x9e   :  { %v524_v52 = vrot.slane %v517_v9, %v508_v29 }
  0x9f   :  { %v591_v48 = vrot.slane %v584_v5, %v508_v29 }
  0xa0   :  { %v526_v25 = vadd.f32 %v524_v52, %v465_v4 }
  0xa1   :  { %v593_v30 = vadd.f32 %v591_v48, %v532_v49 }
  0xa2   :  { %531 = vst.msk [vmem:[#allocation8] sm:$0x7] %vm876_vm0, %v526_v25 }
  0xa3   :  { %594 = vst.msk [vmem:[#allocation9] sm:$0x7] %vm876_vm0, %v593_v30 }
  0xa4   :  { %795 = shalt.err (!%p792_p5)
}
  0xa5   :  { %604 = dma.vmem_to_hbm [thread:$0]  %s602_s2, 48, %s1380_s3, [#allocation4]  }
  0xa6   :  { %s804_s11 = scalar_lea.vmem %s612_s6, 48  ;;  %s808_s12 = scalar_lea.vmem %s612_s6, 64 }
  0xa7   :  { %p805_p6 = scmp.ne.s32.totalorder %s612_s6, %s804_s11  ;;  %p809_p7 = scmp.lt.s32.totalorder %s612_s6, %s612_s6 }
  0xa8   :  { %p810_p8 = scmp.lt.s32.totalorder %s808_s12, %s804_s11 }
  0xaa   :  { %p811_p9 = por %p810_p8, %p809_p7 }
  0xac   :  { %p812_p10 = pnand %p811_p9, %p805_p6 }
  0xae   :  { %815 = shalt.err (!%p812_p10)
}
  0xaf   :  { %614 = dma.vmem_to_hbm [thread:$0]  %s612_s6, 48, %s1381_s4, [#allocation10]  }
  0xb0   :  { %828 = dma.done.wait [#allocation4], 48  }
  0xb1   :  { %829 = vsyncadd [#allocation4], 4294967248 }
  0xb2   :  { %830 = dma.done.wait [#allocation10], 48  }
  0xb3   :  { %831 = vsyncadd [#allocation10], 4294967248 }
  0xb4   :  { %621 = vsyncpa [#allocation3], 1 }
  0xb5   :  { %622 = vsyncpa [#allocation6], 1 }
  0xb6   :  { %623 = vsyncpa [#allocation4], 1 }
  0xb7   :  { %624 = vsyncpa [#allocation10], 1 }

</bundles_post_ra>
